<compile_context>
chip_gen: v5e
topology: v5e:2x2
jax: 0.10.0
libtpu: 0.0.40
codegen_flags: <defaults>
</compile_context>

<pallas_src>
import functools

import jax
import jax.numpy as jnp
from jax.experimental import pallas as pl
from jax.experimental.pallas import tpu as pltpu

_LN_EPS = 1e-5
_VMEM_LIMIT = 48 * 1024 * 1024   # leave headroom on v7x (64 MiB physical)


def _pick_row_tile(m, max_tile):
    """Largest row tile (mult. of 8, <= max_tile) dividing m with >= 2 steps."""
    cap = max(8, min(max_tile, m // 2 if m >= 16 else m))
    for t in (512, 256, 128, 64, 32, 16, 8):
        if t <= cap and m % t == 0:
            return t
    return m   # fallback: single full-extent block


def _layernorm_f32(x, gamma, beta):
    x = x.astype(jnp.float32)
    mu = jnp.mean(x, axis=-1, keepdims=True)
    xc = x - mu
    var = jnp.mean(xc * xc, axis=-1, keepdims=True)
    return xc * jax.lax.rsqrt(var + _LN_EPS) * gamma + beta


# ------------------------------ kernels -------------------------------------


def _ln_qkv_kernel(x_ref, g_ref, b_ref, w_ref, wb_ref, o_ref):
    """y = LayerNorm(x) @ W_qkv + b_qkv."""
    xn = _layernorm_f32(x_ref[...],
                        g_ref[...].astype(jnp.float32),
                        b_ref[...].astype(jnp.float32))
    y = jnp.dot(xn.astype(w_ref.dtype), w_ref[...],
                preferred_element_type=jnp.float32)
    y = y + wb_ref[...].astype(jnp.float32)
    o_ref[...] = y.astype(o_ref.dtype)


def _attn_kernel(qkv_ref, o_ref, masks_ref, *, scale, apply_mask, num_heads):
    """Per-batch attention core with the SAT sigmoid-mask logic.

    qkv_ref: (1, N, 3C) lane-dense projection output for one batch element.
    o_ref:   (1, N, C)  lane-dense context output (head-concatenated).
    masks_ref: (1, 2, N) -> row 0 = mask, row 1 = mask_aug (pre-softmax).
    """
    qkv = qkv_ref[0]                                      # [N, 3C]
    n, c3 = qkv.shape
    c = c3 // 3
    dh = c // num_heads
    q = qkv[:, 0:c]
    k = qkv[:, c:2 * c]
    v = qkv[:, 2 * c:3 * c]

    # Head-mean of pre-softmax rows N-2 / N-1:
    #   mean_h (q_h @ k_h^T) * scale == (q_full @ k_full^T) * scale / H
    q_tail = q[n - 2:n, :]                                # [2, C]
    rows = jnp.einsum("qd,kd->qk", q_tail.astype(jnp.float32),
                      k.astype(jnp.float32),
                      preferred_element_type=jnp.float32)
    rows = jax.nn.sigmoid(rows * (scale / num_heads))     # [2, N]
    masks_ref[0] = rows.astype(masks_ref.dtype)

    if apply_mask:                                        # cur_depth >= 9 (static)
        # Column-oriented mask_fuse (avoids an XLU transpose of [1,N]->[N,1]).
        cols = jnp.einsum("kd,qd->kq", k.astype(jnp.float32),
                          q_tail.astype(jnp.float32),
                          preferred_element_type=jnp.float32)      # [N, 2]
        fuse_col = jnp.max(jax.nn.sigmoid(cols * (scale / num_heads)),
                           axis=-1, keepdims=True)                 # [N, 1]
        v_use = (v.astype(jnp.float32) * fuse_col).astype(v.dtype)
    else:
        v_use = v

    outs = []
    for h in range(num_heads):                            # static unroll
        sl = slice(h * dh, (h + 1) * dh)
        s = jnp.einsum("qd,kd->qk", q[:, sl], k[:, sl],
                       preferred_element_type=jnp.float32) * scale   # [N, N]
        s = s - jnp.max(s, axis=-1, keepdims=True)
        p = jnp.exp(s)
        l = jnp.sum(p, axis=-1, keepdims=True)            # un-masked softmax denom
        oh = jnp.dot(p.astype(v_use.dtype), v_use[:, sl],
                     preferred_element_type=jnp.float32)  # [N, Dh]
        outs.append(oh * pl.reciprocal(l, approx=False))
    o_ref[0] = jnp.concatenate(outs, axis=-1).astype(o_ref.dtype)


def _proj_mlp_kernel(a_ref, x_ref, wp_ref, bp_ref, g2_ref, b2_ref,
                     w1_ref, fb1_ref, w2_ref, fb2_ref, o_ref):
    """Fused: x1 = a@W_proj+b+x ; y = x1 + fc2(GELU(fc1(LN2(x1))))."""
    x1 = jnp.dot(a_ref[...].astype(wp_ref.dtype), wp_ref[...],
                 preferred_element_type=jnp.float32)
    x1 = x1 + bp_ref[...].astype(jnp.float32) + x_ref[...].astype(jnp.float32)
    xn = _layernorm_f32(x1, g2_ref[...].astype(jnp.float32),
                        b2_ref[...].astype(jnp.float32))
    h = jnp.dot(xn.astype(w1_ref.dtype), w1_ref[...],
                preferred_element_type=jnp.float32)
    h = jax.nn.gelu(h + fb1_ref[...].astype(jnp.float32), approximate=False)
    y = jnp.dot(h.astype(w2_ref.dtype), w2_ref[...],
                preferred_element_type=jnp.float32)
    y = y + fb2_ref[...].astype(jnp.float32) + x1
    o_ref[...] = y.astype(o_ref.dtype)


# ------------------------------ wrappers -------------------------------------


def _row_call(kernel, out_cols, out_dtype, row_args, const_args, tm):
    """pallas_call row-tiled over M; const_args stay VMEM-resident."""
    m = row_args[0].shape[0]
    grid = (m // tm,)
    in_specs = []
    for a in row_args:
        in_specs.append(pl.BlockSpec((tm, a.shape[1]), lambda i: (i, 0)))
    for a in const_args:
        in_specs.append(pl.BlockSpec((a.shape[0], a.shape[1]),
                                     lambda i: (0, 0)))
    return pl.pallas_call(
        kernel,
        out_shape=jax.ShapeDtypeStruct((m, out_cols), out_dtype),
        grid_spec=pltpu.PrefetchScalarGridSpec(
            num_scalar_prefetch=0,
            grid=grid,
            in_specs=in_specs,
            out_specs=pl.BlockSpec((tm, out_cols), lambda i: (i, 0)),
        ),
        compiler_params=pltpu.CompilerParams(
            dimension_semantics=("parallel",),
            vmem_limit_bytes=_VMEM_LIMIT),
    )(*row_args, *const_args)


def _attention(qkv3, scale, num_heads, apply_mask):
    B, N, C3 = qkv3.shape
    C = C3 // 3
    kernel = functools.partial(_attn_kernel, scale=scale,
                               apply_mask=apply_mask, num_heads=num_heads)
    return pl.pallas_call(
        kernel,
        out_shape=(jax.ShapeDtypeStruct((B, N, C), qkv3.dtype),
                   jax.ShapeDtypeStruct((B, 2, N), jnp.float32)),
        grid_spec=pltpu.PrefetchScalarGridSpec(
            num_scalar_prefetch=0,
            grid=(B,),
            in_specs=[pl.BlockSpec((1, N, C3), lambda b: (b, 0, 0))],
            out_specs=[pl.BlockSpec((1, N, C), lambda b: (b, 0, 0)),
                       pl.BlockSpec((1, 2, N), lambda b: (b, 0, 0))],
        ),
        compiler_params=pltpu.CompilerParams(
            dimension_semantics=("parallel",),
            vmem_limit_bytes=_VMEM_LIMIT),
    )(qkv3)


def block_pallas(x, p, num_heads, cur_depth):
    """x: [B, N, C].  Weights stored [in, out] (transpose of nn.Linear.weight)."""
    B, N, C = x.shape
    Dh = C // num_heads
    scale = Dh ** -0.5
    M = B * N
    tm_qkv = _pick_row_tile(M, 512)
    tm_mlp = _pick_row_tile(M, 256)

    x2d = x.reshape(M, C)

    # 1) norm1 + qkv projection (row-tiled, weights VMEM-resident)
    qkv_flat = _row_call(_ln_qkv_kernel, 3 * C, x.dtype,
                         row_args=[x2d],
                         const_args=[p["g1"], p["b1"], p["w_qkv"], p["b_qkv"]],
                         tm=tm_qkv)
    qkv3 = qkv_flat.reshape(B, N, 3 * C)          # free reshape, no transpose

    # 2) attention core (per batch) with mask logic; lane-dense (N, C) output
    ctx, masks = _attention(qkv3, scale, num_heads,
                            apply_mask=(cur_depth >= 9))
    ctx2d = ctx.reshape(M, C)                      # free reshape, no transpose

    # 3) fused: attn-proj + residual + norm2 + MLP + residual
    out2d = _row_call(_proj_mlp_kernel, C, x.dtype,
                      row_args=[ctx2d, x2d],
                      const_args=[p["w_proj"], p["b_proj"], p["g2"], p["b2"],
                                  p["w1"], p["fb1"], p["w2"], p["fb2"]],
                      tm=tm_mlp)

    mask = masks[:, 0, :].reshape(B, 1, 1, N)
    mask_aug = masks[:, 1, :].reshape(B, 1, 1, N)
    mask_fuse = jnp.maximum(mask, mask_aug)
    return out2d.reshape(B, N, C), mask, mask_fuse, mask_aug


# ------------------------------ reference ------------------------------------


def block_reference(x, p, num_heads, cur_depth):
    B, N, C = x.shape
    dh = C // num_heads
    scale = dh ** -0.5
    hp = jax.lax.Precision.HIGHEST

    def ln(v, g, b):
        mu = jnp.mean(v, -1, keepdims=True)
        var = jnp.mean((v - mu) ** 2, -1, keepdims=True)
        return (v - mu) * jax.lax.rsqrt(var + _LN_EPS) * g + b

    xn = ln(x, p["g1"], p["b1"])
    qkv = jnp.einsum("bnc,cd->bnd", xn, p["w_qkv"], precision=hp) + p["b_qkv"]
    qkv = qkv.reshape(B, N, 3, num_heads, dh).transpose(2, 0, 3, 1, 4)
    q, k, v = qkv[0], qkv[1], qkv[2]
    attn = jnp.einsum("bhqd,bhkd->bhqk", q, k, precision=hp) * scale
    mask = jax.nn.sigmoid(
        attn[:, :, N - 2, :][:, :, None, :].mean(axis=1)[:, None])
    mask_aug = jax.nn.sigmoid(
        attn[:, :, N - 1, :][:, :, None, :].mean(axis=1)[:, None])
    mask_fuse = jnp.maximum(mask, mask_aug)
    attn = jax.nn.softmax(attn, axis=-1)
    if cur_depth >= 9:
        attn = attn * mask_fuse
    o = jnp.einsum("bhqk,bhkd->bhqd", attn, v, precision=hp)
    o = o.transpose(0, 2, 1, 3).reshape(B, N, C)
    o = jnp.einsum("bnc,cd->bnd", o, p["w_proj"], precision=hp) + p["b_proj"]
    x = x + o
    h = ln(x, p["g2"], p["b2"])
    h = jnp.einsum("bnc,ch->bnh", h, p["w1"], precision=hp) + p["fb1"]
    h = jax.nn.gelu(h, approximate=False)
    y = jnp.einsum("bnh,hc->bnc", h, p["w2"], precision=hp) + p["fb2"]
    x = x + y
    return x, mask, mask_fuse, mask_aug


# ------------------------------ test -----------------------------------------

if __name__ == "__main__":
    B, N = 2, 16
    dim = 128            # lane-dense channel width
    num_heads = 4
    hidden = int(dim * 4.0)
    cur_depth = 9        # >= 9 -> attention is multiplied by mask_fuse

    key = jax.random.PRNGKey(0)
    ks = jax.random.split(key, 12)
    s = 0.05
    x = jax.random.normal(ks[0], (B, N, dim), jnp.float32)
    params = dict(
        g1=1.0 + 0.1 * jax.random.normal(ks[1], (1, dim), jnp.float32),
        b1=0.05 * jax.random.normal(ks[2], (1, dim), jnp.float32),
        w_qkv=s * jax.random.normal(ks[3], (dim, 3 * dim), jnp.float32),
        b_qkv=jnp.zeros((1, 3 * dim), jnp.float32),   # qkv_bias=False
        w_proj=s * jax.random.normal(ks[4], (dim, dim), jnp.float32),
        b_proj=s * jax.random.normal(ks[5], (1, dim), jnp.float32),
        g2=1.0 + 0.1 * jax.random.normal(ks[6], (1, dim), jnp.float32),
        b2=0.05 * jax.random.normal(ks[7], (1, dim), jnp.float32),
        w1=s * jax.random.normal(ks[8], (dim, hidden), jnp.float32),
        fb1=s * jax.random.normal(ks[9], (1, hidden), jnp.float32),
        w2=s * jax.random.normal(ks[10], (hidden, dim), jnp.float32),
        fb2=s * jax.random.normal(ks[11], (1, dim), jnp.float32),
    )

    y, mask, mask_fuse, mask_aug = block_pallas(x, params, num_heads, cur_depth)
    y = jax.block_until_ready(y)

    yr, mr, mfr, mar = block_reference(x, params, num_heads, cur_depth)

    assert y.shape == (B, N, dim)
    assert mask.shape == (B, 1, 1, N)
    assert mask_fuse.shape == (B, 1, 1, N)
    assert mask_aug.shape == (B, 1, 1, N)
    for got, ref in ((y, yr), (mask, mr), (mask_fuse, mfr), (mask_aug, mar)):
        assert jnp.allclose(got, ref, atol=1e-4, rtol=1e-4)

    print("KERNEL_OK")
</pallas_src>

<mosaic_0001>
module attributes {stable_mosaic.version = 11 : i64} {
  func.func @_ln_qkv_kernel(%arg0: i32, %arg1: memref<16x128xf32, #tpu.memory_space<vmem>>, %arg2: memref<1x128xf32, #tpu.memory_space<vmem>>, %arg3: memref<1x128xf32, #tpu.memory_space<vmem>>, %arg4: memref<128x384xf32, #tpu.memory_space<vmem>>, %arg5: memref<1x384xf32, #tpu.memory_space<vmem>>, %arg6: memref<16x384xf32, #tpu.memory_space<vmem>>) attributes {dimension_semantics = [#tpu.dimension_semantics<parallel>], iteration_bounds = array<i64: 2>, scalar_prefetch = 0 : i64, scratch_operands = 0 : i64, tpu.core_type = #tpu.core_type<tc>, window_params = [{transform_indices = @transform_0, window_bounds = array<i64: 16, 128>}, {pipeline_mode = #tpu.pipeline_mode<synchronous>, transform_indices = @transform_1, window_bounds = array<i64: 1, 128>}, {pipeline_mode = #tpu.pipeline_mode<synchronous>, transform_indices = @transform_2, window_bounds = array<i64: 1, 128>}, {pipeline_mode = #tpu.pipeline_mode<synchronous>, transform_indices = @transform_3, window_bounds = array<i64: 128, 384>}, {pipeline_mode = #tpu.pipeline_mode<synchronous>, transform_indices = @transform_4, window_bounds = array<i64: 1, 384>}, {transform_indices = @transform_5, window_bounds = array<i64: 16, 384>}]} {
    %c0 = arith.constant 0 : index
    %c0_0 = arith.constant 0 : index
    %0 = vector.load %arg1[%c0, %c0_0] : memref<16x128xf32, #tpu.memory_space<vmem>>, vector<16x128xf32>
    %c0_1 = arith.constant 0 : index
    %c0_2 = arith.constant 0 : index
    %1 = vector.load %arg2[%c0_1, %c0_2] : memref<1x128xf32, #tpu.memory_space<vmem>>, vector<1x128xf32>
    %c0_3 = arith.constant 0 : index
    %c0_4 = arith.constant 0 : index
    %2 = vector.load %arg3[%c0_3, %c0_4] : memref<1x128xf32, #tpu.memory_space<vmem>>, vector<1x128xf32>
    %cst = arith.constant dense<0.000000e+00> : vector<16xf32>
    %3 = vector.multi_reduction <add>, %0, %cst [1] : vector<16x128xf32> to vector<16xf32>
    %4 = vector.shape_cast %3 : vector<16xf32> to vector<16x1xf32>
    %cst_5 = arith.constant 1.280000e+02 : f32
    %5 = vector.broadcast %cst_5 : f32 to vector<16x1xf32>
    %6 = arith.divf %4, %5 : vector<16x1xf32>
    %7 = vector.broadcast %6 : vector<16x1xf32> to vector<16x128xf32>
    %8 = arith.subf %0, %7 : vector<16x128xf32>
    %9 = arith.mulf %8, %8 : vector<16x128xf32>
    %cst_6 = arith.constant dense<0.000000e+00> : vector<16xf32>
    %10 = vector.multi_reduction <add>, %9, %cst_6 [1] : vector<16x128xf32> to vector<16xf32>
    %11 = vector.shape_cast %10 : vector<16xf32> to vector<16x1xf32>
    %cst_7 = arith.constant 1.280000e+02 : f32
    %12 = vector.broadcast %cst_7 : f32 to vector<16x1xf32>
    %13 = arith.divf %11, %12 : vector<16x1xf32>
    %cst_8 = arith.constant 9.99999974E-6 : f32
    %14 = vector.broadcast %cst_8 : f32 to vector<16x1xf32>
    %15 = arith.addf %13, %14 : vector<16x1xf32>
    %16 = math.rsqrt %15 : vector<16x1xf32>
    %17 = vector.broadcast %16 : vector<16x1xf32> to vector<16x128xf32>
    %18 = arith.mulf %8, %17 : vector<16x128xf32>
    %19 = vector.broadcast %1 : vector<1x128xf32> to vector<16x128xf32>
    %20 = arith.mulf %18, %19 : vector<16x128xf32>
    %21 = vector.broadcast %2 : vector<1x128xf32> to vector<16x128xf32>
    %22 = arith.addf %20, %21 : vector<16x128xf32>
    %c0_9 = arith.constant 0 : index
    %c0_10 = arith.constant 0 : index
    %23 = vector.load %arg4[%c0_9, %c0_10] : memref<128x384xf32, #tpu.memory_space<vmem>>, vector<128x384xf32>
    %cst_11 = arith.constant dense<0.000000e+00> : vector<16x384xf32>
    %24 = tpu.matmul %22, %23, %cst_11 {dimension_numbers = #tpu.dot_dimension_numbers<[1], [0], [0], [1], [0, 0, 1, 1], [], []>} : vector<16x128xf32>, vector<128x384xf32>, vector<16x384xf32> -> vector<16x384xf32>
    %c0_12 = arith.constant 0 : index
    %c0_13 = arith.constant 0 : index
    %25 = vector.load %arg5[%c0_12, %c0_13] : memref<1x384xf32, #tpu.memory_space<vmem>>, vector<1x384xf32>
    %26 = vector.broadcast %25 : vector<1x384xf32> to vector<16x384xf32>
    %27 = arith.addf %24, %26 : vector<16x384xf32>
    %c0_14 = arith.constant 0 : index
    %c0_15 = arith.constant 0 : index
    %28 = vector.load %arg6[%c0_14, %c0_15] : memref<16x384xf32, #tpu.memory_space<vmem>>, vector<16x384xf32>
    tpu.vector_store %arg6[%c0_14, %c0_15], %27 {strides = array<i32>} : memref<16x384xf32, #tpu.memory_space<vmem>>, vector<16x384xf32>,
    return
  }
  func.func @transform_0(%arg0: i32) -> (i32, i32) {
    %c0_i32 = arith.constant 0 : i32
    %c0_i32_0 = arith.constant 0 : i32
    return %arg0, %c0_i32 : i32, i32
  }
  func.func @transform_1(%arg0: i32) -> (i32, i32) {
    %c0_i32 = arith.constant 0 : i32
    %c0_i32_0 = arith.constant 0 : i32
    %c0_i32_1 = arith.constant 0 : i32
    return %c0_i32, %c0_i32_0 : i32, i32
  }
  func.func @transform_2(%arg0: i32) -> (i32, i32) {
    %c0_i32 = arith.constant 0 : i32
    %c0_i32_0 = arith.constant 0 : i32
    %c0_i32_1 = arith.constant 0 : i32
    return %c0_i32, %c0_i32_0 : i32, i32
  }
  func.func @transform_3(%arg0: i32) -> (i32, i32) {
    %c0_i32 = arith.constant 0 : i32
    %c0_i32_0 = arith.constant 0 : i32
    %c0_i32_1 = arith.constant 0 : i32
    return %c0_i32, %c0_i32_0 : i32, i32
  }
  func.func @transform_4(%arg0: i32) -> (i32, i32) {
    %c0_i32 = arith.constant 0 : i32
    %c0_i32_0 = arith.constant 0 : i32
    %c0_i32_1 = arith.constant 0 : i32
    return %c0_i32, %c0_i32_0 : i32, i32
  }
  func.func @transform_5(%arg0: i32) -> (i32, i32) {
    %c0_i32 = arith.constant 0 : i32
    %c0_i32_0 = arith.constant 0 : i32
    return %arg0, %c0_i32 : i32, i32
  }
}

</mosaic_0001>

<bundles_post_ra>
// kernel: tpu_custom_call.1
= control target key start
LH: loop header
LB: loop body
LE: loop exit
PB: predicated region body
PF: predicated region fallthrough
CT: control target
= control target key end

     0   :  { %10 = vsyncpa [#allocation3], 0  ;;  %s1150_s0 = inlined_call_operand.hbm [shape: f32[32,128], index: 0, kind: input, shape index: {}]   ;;  %s1151_s1 = inlined_call_operand.hbm [shape: f32[1,128], index: 1, kind: input, shape index: {}]   ;;  %s1152_s2 = inlined_call_operand.hbm [shape: f32[1,128], index: 2, kind: input, shape index: {}]   ;;  %s1153_s3 = inlined_call_operand.hbm [shape: f32[128,384], index: 3, kind: input, shape index: {}]   ;;  %s1154_s4 = inlined_call_operand.vmem [shape: f32[1,384], index: 4, kind: input, shape index: {}]   ;;  %s1155_s5 = inlined_call_operand.hbm [shape: f32[32,384], index: 5, kind: output, shape index: {}]  }
   0x1   :  { %12 = vsyncpa [#allocation3 + $0x1], 0 }
   0x2   :  { %13 = vsyncpa [#allocation6], 0 }
   0x3   :  { %14 = vsyncpa [#allocation9], 0 }
   0x4   :  { %15 = vsyncpa [#allocation4], 0 }
   0x5   :  { %17 = vsyncpa [#allocation4 + $0x1], 0  ;;  %s970_s18 = smov 0   ;;  %s972_s19 = smov 0  }
   0x6   :  { %s974_s20 = smov 0   ;;  %s976_s21 = smov 0  }
   0x7 LB: > { %s991_s22 = sadd.s32 4294967295, %s928_s21   ;;  %s604_s23 = sadd.s32 4294967294, %s928_s21   ;;  %s928_s21 = sphi %s976_s21, %s1166_s21   ;;  %s924_s20 = sphi %s974_s20, %s1165_s20   ;;  %s920_s19 = sphi %s972_s19, %s1164_s19   ;;  %s916_s18 = sphi %s970_s18, %s1163_s18  }
   0x8   : > { %p43_p0 = scmp.ne.s32.totalorder %s920_s19, %s916_s18  ;;  %p44_p1 = scmp.eq.s32.totalorder %s991_s22, 0 }
   0x9   : > { %p151_p2 = scmp.eq.s32.totalorder %s991_s22, 1  ;;  %p157_p3 = scmp.eq.s32.totalorder %s604_s23, 1 }
   0xa   : > { %p1000_p4 = por %p44_p1, %p43_p0  ;;  %p605_p5 = scmp.ge.s32.totalorder %s928_s21, 1 }
   0xb   : > { %p1005_p6 = por %p157_p3, %p43_p0  ;;  %p164_p7 = scmp.lt.s32.totalorder %s928_s21, 3 }
   0xc   : > { %s176_s28 = sshll.u32 %s1151_s1, 4  ;;  %s930_s30 = smov [#allocation5]   ;;  %s177_s28 = int_to_ptr.hbm [resolvable:$true] %s176_s28 }
   0xd   : > { %p1013_p8 = pnand %p605_p5, %p164_p7  ;;  %s178_s6 = sshll.u32 %s930_s30, 4  ;;  %s179_s6 = int_to_ptr.vmem [resolvable:$true] %s178_s6 }
   0xe   : > { %s188_s9 = sshll.u32 %s1152_s2, 4  ;;  %s199_s13 = sshll.u32 %s1153_s3, 4  ;;  %s189_s9 = int_to_ptr.hbm [resolvable:$true] %s188_s9  ;;  %s200_s13 = int_to_ptr.hbm [resolvable:$true] %s199_s13 }
   0xf   : > { %p658_p10 = pneg %p1013_p8  ;;  %s931_s14 = smov [#allocation7]  }
  0x10   : > { %s190_s15 = sshll.u32 %s931_s14, 4  ;;  %s932_s16 = smov [#allocation8]   ;;  %s191_s15 = int_to_ptr.vmem [resolvable:$true] %s190_s15 }
  0x11   : > { %p1025_p11 = pnand %p658_p10, %p44_p1  ;;  %s201_s17 = sshll.u32 %s932_s16, 4  ;;  %s202_s17 = int_to_ptr.vmem [resolvable:$true] %s201_s17 }
  0x12   : > { %s933_s23 = smov 384   ;;  %s934_s26 = smov 24  }
  0x13   : > { %661 = dma.hbm_to_vmem [thread:$0]  (!%p1025_p11), %s177_s28, 16, %s179_s6, [#allocation6]  }
  0x14   : > { %664 = dma.hbm_to_vmem [thread:$0]  (!%p1025_p11), %s189_s9, 16, %s191_s15, [#allocation6]  }
  0x15   : > { %667 = dma.hbm_to_vmem [thread:$0]  (!%p1025_p11), %s200_s13, 6144, %s202_s17, [#allocation9], %s933_s23, %s933_s23, %s934_s26  }
  0x16   : > { %s1039_s27 = sadd.s32 1, %s928_s21   ;;  %s30_s30 = sadd.s32 1, %s924_s20 }
  0x17   : > { %s27_s28 = ssub.s32 %s928_s21, %s1039_s27  ;;  %p37_p13 = scmp.ne.s32.totalorder %s924_s20, %s920_s19 }
  0x18   : > { %p28_p12 = scmp.eq.s32.totalorder %s27_s28, 0  ;;  %p38_p0 = scmp.eq.s32.totalorder %s928_s21, 0 }
  0x19   : > { %p679_p3 = scmp.lt.s32.totalorder %s928_s21, 2  ;;  %p1053_p7 = por %p151_p2, %p37_p13 }
  0x1a   : > { %s1049_s6 = scalar_select %p28_p12, %s924_s20, %s30_s30  }
  0x1b   : > { %p39_p5 = por %p38_p0, %p37_p13  ;;  %s218_s8 = sand.u32 1, %s924_s20  }
  0x1c   : > { %s623_s9 = sshll.u32 %s928_s21, 4  ;;  %s610_s10 = sshll.u32 %s218_s8, 4 }
  0x1d   : > { %s227_s13 = scalar_lea.hbm %s1150_s0, %s623_s9  ;;  %s222_s15 = scalar_lea.vmem [#allocation2], %s610_s10 }
  0x1e   : > { %s228_s14 = sshll.u32 %s227_s13, 4  ;;  %s230_s16 = sshll.u32 %s222_s15, 4  ;;  %s229_s14 = int_to_ptr.hbm [resolvable:$true] %s228_s14  ;;  %s231_s16 = int_to_ptr.vmem [resolvable:$true] %s230_s16 }
  0x1f   : > { %p1064_p10 = pnand %p679_p3, %p39_p5  ;;  %s219_s23 = scalar_lea.sflag [#allocation3], %s218_s8 }
  0x20   : > { %s824_s26 = sshra.s32 %s229_s14, 4  ;;  %s831_s10 = scalar_lea.hbm %s1150_s0, 32  ;;  %s825_s26 = int_to_ptr.hbm [resolvable:$true] %s824_s26 }
  0x21   : > { %s826_s28 = scalar_lea.hbm %s825_s26, 16  ;;  %p828_p11 = pneg %p1064_p10 }
  0x22   : > { %p827_p2 = scmp.ne.s32.totalorder %s825_s26, %s826_s28  ;;  %p832_p0 = scmp.lt.s32.totalorder %s825_s26, %s1150_s0 }
  0x23   : > { %p833_p3 = scmp.lt.s32.totalorder %s831_s10, %s826_s28 }
  0x24   : > { %p829_p12 = pnand %p828_p11, %p827_p2 }
  0x25   : > { %p834_p5 = por %p833_p3, %p832_p0 }
  0x26   : > { %p830_p13 = pneg %p829_p12 }
  0x28   : > { %p835_p9 = pnand %p834_p5, %p830_p13 }
  0x2a   : > { %838 = shalt.err (!%p835_p9)
}
  0x2b   : > { %s935_s8 = smov 128   ;;  %s936_s13 = smov 8  }
  0x2c   : > { %671 = dma.hbm_to_vmem [thread:$0]  (!%p1064_p10), %s229_s14, 256, %s231_s16, %s219_s23, %s935_s8, %s935_s8, %s936_s13  }
  0x2d   : > { %242 = sbr.rel (%p1013_p8) target bundleno = 469 (0x1d5), region = 40  ;;  %s1081_s15 = sand.u32 (!%p1013_p8), 1, %s920_s19  }
  0x2e   : > { %s614_s30 = sshll.u32 (!%p1013_p8), %s1081_s15, 4  ;;  %s245_s26 = scalar_lea.sflag (!%p1013_p8), [#allocation3], %s1081_s15 }
  0x2f   : > { %s248_s28 = scalar_lea.vmem (!%p1013_p8), [#allocation2], %s614_s30 }
  0x32   : > { %899 = dma.done.wait (%p1000_p4), %s245_s26, 256  }
  0x33   : > { %901 = vsyncadd (%p1000_p4), %s245_s26, 4294967040 }
  0x34   : > { %903 = dma.done.wait (%p44_p1), [#allocation6], 32  }
  0x35   : > { %905 = vsyncadd (%p44_p1), [#allocation6], 4294967264 }
  0x36   : > { %907 = dma.done.wait (%p44_p1), [#allocation9], 6144  }
  0x37   : > { %909 = vsyncadd (%p44_p1), [#allocation9], 4294961152  ;;  %v293_v0 = vld [vmem:[%s248_s28] sm:$0xff]  ;;  %v294_v1 = vld [vmem:[%s248_s28 + $0x8] sm:$0xff]  ;;  %v937_v2 = vmov 128.0   ;;  %s640_s14 = smul.u32 48, %s1081_s15 }
  0x38   : > { %297 = vadd.xlane.f32.xlu0 %v293_v0  ;;  %728 = vrcp.f32 %v937_v2  ;;  %v399_v5 = vld [vmem:[#allocation8 + $0x168] sm:$0xff]  ;;  %v400_v6 = vld [vmem:[#allocation8 + $0x170] sm:$0xff]  ;;  %v401_v7 = vld [vmem:[#allocation8 + $0x178] sm:$0xff]  ;;  %s641_s17 = smul.u32 48, %s991_s22  ;;  %s486_s22 = scalar_lea.sflag [#allocation4], %s1081_s15 }
  0x39   : > { %410 = vmatpush.msra.mxu0 %v399_v5  ;;  %433 = vmatpush.msra.mxu1 %v400_v6  ;;  %v396_v8 = vld [vmem:[#allocation8 + $0x150] sm:$0xff]  ;;  %v397_v9 = vld [vmem:[#allocation8 + $0x158] sm:$0xff]  ;;  %v398_v10 = vld [vmem:[#allocation8 + $0x160] sm:$0xff]  ;;  %s290_s16 = scalar_lea.vmem [#allocation10], %s640_s14  ;;  %s874_s28 = scalar_lea.hbm %s1155_s5, 96 }
  0x3a   : > { %456 = vmatpush.msra.mxu2 %v401_v7  ;;  %624 = vmatpush.msra.mxu3 %v399_v5  ;;  %v393_v23 = vld [vmem:[#allocation8 + $0x138] sm:$0xff]  ;;  %v394_v24 = vld [vmem:[#allocation8 + $0x140] sm:$0xff]  ;;  %v395_v25 = vld [vmem:[#allocation8 + $0x148] sm:$0xff]  ;;  %s498_s10 = scalar_lea.hbm %s1155_s5, %s641_s17  ;;  %s499_s11 = sshll.u32 %s290_s16, 4  ;;  %s500_s11 = int_to_ptr.vmem [resolvable:$true] %s499_s11 }
  0x3b   : > { %411 = vmatpush.msra.mxu0 %v396_v8  ;;  %434 = vmatpush.msra.mxu1 %v397_v9  ;;  %v390_v26 = vld [vmem:[#allocation8 + $0x120] sm:$0xff]  ;;  %v391_v27 = vld [vmem:[#allocation8 + $0x128] sm:$0xff]  ;;  %v392_v28 = vld [vmem:[#allocation8 + $0x130] sm:$0xff]  ;;  %s501_s12 = sshll.u32 %s498_s10, 4  ;;  %s502_s12 = int_to_ptr.hbm [resolvable:$true] %s501_s12 }
  0x3c   : > { %457 = vmatpush.msra.mxu2 %v398_v10  ;;  %625 = vmatpush.msra.mxu3 %v396_v8  ;;  %v387_v29 = vld [vmem:[#allocation8 + $0x108] sm:$0xff]  ;;  %v388_v30 = vld [vmem:[#allocation8 + $0x110] sm:$0xff]  ;;  %v389_v31 = vld [vmem:[#allocation8 + $0x118] sm:$0xff]  ;;  %s868_s8 = sshra.s32 %s502_s12, 4  ;;  %s869_s8 = int_to_ptr.hbm [resolvable:$true] %s868_s8 }
  0x3d   : > { %412 = vmatpush.msra.mxu0 %v393_v23  ;;  %435 = vmatpush.msra.mxu1 %v394_v24  ;;  %v384_v32 = vld [vmem:[#allocation8 + $0xf0] sm:$0xff]  ;;  %v385_v33 = vld [vmem:[#allocation8 + $0xf8] sm:$0xff]  ;;  %v386_v34 = vld [vmem:[#allocation8 + $0x100] sm:$0xff]  ;;  %s870_s13 = scalar_lea.hbm %s869_s8, 48  ;;  %p875_p9 = scmp.lt.s32.totalorder %s869_s8, %s1155_s5 }
  0x3e   : > { %v729_v3 = vpop.eup %728  ;;  %458 = vmatpush.msra.mxu2 %v395_v25  ;;  %626 = vmatpush.msra.mxu3 %v393_v23  ;;  %v381_v35 = vld [vmem:[#allocation8 + $0xd8] sm:$0xff]  ;;  %v382_v36 = vld [vmem:[#allocation8 + $0xe0] sm:$0xff]  ;;  %v383_v37 = vld [vmem:[#allocation8 + $0xe8] sm:$0xff]  ;;  %p871_p1 = scmp.ne.s32.totalorder %s869_s8, %s870_s13  ;;  %p876_p10 = scmp.lt.s32.totalorder %s874_s28, %s870_s13 }
  0x3f   : > { %v302_v4 = vmul.f32 128.0, %v729_v3  ;;  %vm306_vm0 = vweird.f32 %v729_v3  ;;  %413 = vmatpush.msra.mxu0 %v390_v26  ;;  %436 = vmatpush.msra.mxu1 %v391_v27  ;;  %v378_v38 = vld [vmem:[#allocation8 + $0xc0] sm:$0xff]  ;;  %v379_v39 = vld [vmem:[#allocation8 + $0xc8] sm:$0xff]  ;;  %v380_v40 = vld [vmem:[#allocation8 + $0xd0] sm:$0xff] }
  0x40   : > { %299 = vadd.xlane.f32.xlu0 %v294_v1  ;;  %459 = vmatpush.msra.mxu2 %v392_v28  ;;  %v375_v41 = vld [vmem:[#allocation8 + $0xa8] sm:$0xff]  ;;  %v376_v42 = vld [vmem:[#allocation8 + $0xb0] sm:$0xff]  ;;  %v377_v43 = vld [vmem:[#allocation8 + $0xb8] sm:$0xff]  ;;  %p872_p4 = pnand %p871_p1, %p1053_p7  ;;  %p877_p2 = por %p876_p10, %p875_p9 }
  0x41   : > { %v303_v11 = vsub.f32 1.0, %v302_v4  ;;  %627 = vmatpush.msra.mxu3 %v390_v26  ;;  %414 = vmatpush.msra.mxu0 %v387_v29  ;;  %v372_v44 = vld [vmem:[#allocation8 + $0x90] sm:$0xff]  ;;  %v373_v45 = vld [vmem:[#allocation8 + $0x98] sm:$0xff]  ;;  %v374_v46 = vld [vmem:[#allocation8 + $0xa0] sm:$0xff] }
  0x42   : > { %437 = vmatpush.msra.mxu1 %v388_v30  ;;  %460 = vmatpush.msra.mxu2 %v389_v31  ;;  %v369_v47 = vld [vmem:[#allocation8 + $0x78] sm:$0xff]  ;;  %v370_v48 = vld [vmem:[#allocation8 + $0x80] sm:$0xff]  ;;  %v371_v49 = vld [vmem:[#allocation8 + $0x88] sm:$0xff]  ;;  %p873_p8 = pneg %p872_p4 }
  0x43   : > { %v304_v12 = vmul.f32 %v729_v3, %v303_v11  ;;  %628 = vmatpush.msra.mxu3 %v387_v29  ;;  %415 = vmatpush.msra.mxu0 %v384_v32  ;;  %v366_v50 = vld [vmem:[#allocation8 + $0x60] sm:$0xff]  ;;  %v367_v51 = vld [vmem:[#allocation8 + $0x68] sm:$0xff]  ;;  %v368_v52 = vld [vmem:[#allocation8 + $0x70] sm:$0xff] }
  0x44   : > { %438 = vmatpush.msra.mxu1 %v385_v33  ;;  %461 = vmatpush.msra.mxu2 %v386_v34  ;;  %v363_v53 = vld [vmem:[#allocation8 + $0x48] sm:$0xff]  ;;  %v364_v54 = vld [vmem:[#allocation8 + $0x50] sm:$0xff]  ;;  %v365_v55 = vld [vmem:[#allocation8 + $0x58] sm:$0xff]  ;;  %p878_p11 = pnand %p877_p2, %p873_p8 }
  0x45   : > { %v305_v13 = vadd.f32 %v729_v3, %v304_v12  ;;  %629 = vmatpush.msra.mxu3 %v384_v32  ;;  %416 = vmatpush.msra.mxu0 %v381_v35  ;;  %v360_v56 = vld [vmem:[#allocation8 + $0x30] sm:$0xff]  ;;  %v361_v57 = vld [vmem:[#allocation8 + $0x38] sm:$0xff]  ;;  %v362_v58 = vld [vmem:[#allocation8 + $0x40] sm:$0xff] }
  0x46   : > { %439 = vmatpush.msra.mxu1 %v382_v36  ;;  %462 = vmatpush.msra.mxu2 %v383_v37  ;;  %v357_v59 = vld [vmem:[#allocation8 + $0x18] sm:$0xff]  ;;  %v358_v60 = vld [vmem:[#allocation8 + $0x20] sm:$0xff]  ;;  %v359_v61 = vld [vmem:[#allocation8 + $0x28] sm:$0xff] }
  0x47   : > { %v1097_v14 = vsel %vm306_vm0, %v729_v3, %v305_v13  ;;  %630 = vmatpush.msra.mxu3 %v381_v35  ;;  %417 = vmatpush.msra.mxu0 %v378_v38  ;;  %v354_v62 = vld [vmem:[#allocation8] sm:$0xff]  ;;  %v355_v63 = vld [vmem:[#allocation8 + $0x8] sm:$0xff] }
  0x48   : > { %440 = vmatpush.msra.mxu1 %v379_v39  ;;  %463 = vmatpush.msra.mxu2 %v380_v40 }
  0x49   : > { %631 = vmatpush.msra.mxu3 %v378_v38  ;;  %418 = vmatpush.msra.mxu0 %v375_v41 }
  0x4a   : > { %441 = vmatpush.msra.mxu1 %v376_v42  ;;  %464 = vmatpush.msra.mxu2 %v377_v43 }
  0x4b   : > { %632 = vmatpush.msra.mxu3 %v375_v41  ;;  %419 = vmatpush.msra.mxu0 %v372_v44 }
  0x4c   : > { %442 = vmatpush.msra.mxu1 %v373_v45  ;;  %465 = vmatpush.msra.mxu2 %v374_v46 }
  0x4d   : > { %633 = vmatpush.msra.mxu3 %v372_v44  ;;  %420 = vmatpush.msra.mxu0 %v369_v47 }
  0x4e   : > { %443 = vmatpush.msra.mxu1 %v370_v48  ;;  %466 = vmatpush.msra.mxu2 %v371_v49 }
  0x4f   : > { %634 = vmatpush.msra.mxu3 %v369_v47  ;;  %421 = vmatpush.msra.mxu0 %v366_v50 }
  0x50   : > { %444 = vmatpush.msra.mxu1 %v367_v51  ;;  %467 = vmatpush.msra.mxu2 %v368_v52 }
  0x51   : > { %635 = vmatpush.msra.mxu3 %v366_v50  ;;  %422 = vmatpush.msra.mxu0 %v363_v53 }
  0x52   : > { %445 = vmatpush.msra.mxu1 %v364_v54  ;;  %468 = vmatpush.msra.mxu2 %v365_v55 }
  0x53   : > { %636 = vmatpush.msra.mxu3 %v363_v53  ;;  %423 = vmatpush.msra.mxu0 %v360_v56 }
  0x54   : > { %446 = vmatpush.msra.mxu1 %v361_v57  ;;  %469 = vmatpush.msra.mxu2 %v362_v58 }
  0x55   : > { %637 = vmatpush.msra.mxu3 %v360_v56  ;;  %424 = vmatpush.msra.mxu0 %v357_v59 }
  0x56   : > { %447 = vmatpush.msra.mxu1 %v358_v60  ;;  %470 = vmatpush.msra.mxu2 %v359_v61 }
  0x57   : > { %638 = vmatpush.msra.mxu3 %v357_v59  ;;  %425 = vmatpush.msra.mxu0 %v354_v62 }
  0x58   : > { %448 = vmatpush.msra.mxu1 %v355_v63 }
  0x59   : > { %639 = vmatpush.msra.mxu3 %v354_v62 }
  0xab   : > { %v298_v15 = vpop.xlane.xlu0 %297 }
  0xac   : > { %v308_v16 = vmul.f32 %v1097_v14, %v298_v15 }
  0xae   : > { %v1100_v17 = vsub.f32 %v293_v0, %v308_v16  ;;  %v356_v0 = vld [vmem:[#allocation8 + $0x10] sm:$0xff]  ;;  %v726_v16 = vld [vmem:[#allocation5] ss:$0 sm:$0xff] }
  0xaf   : > { %471 = vmatpush.msra.mxu2 %v356_v0 }
  0xb0   : > { %v312_v18 = vmul.f32 %v1100_v17, %v1100_v17 }
  0xb2   : > { %314 = vadd.xlane.f32.xlu1 %v312_v18 }
  0xb3   : > { %v300_v19 = vpop.xlane.xlu0 %299 }
  0xb4   : > { %v309_v20 = vmul.f32 %v1097_v14, %v300_v19 }
  0xb6   : > { %v1105_v21 = vsub.f32 %v294_v1, %v309_v20 }
  0xb8   : > { %v313_v22 = vmul.f32 %v1105_v21, %v1105_v21 }
  0xba   : > { %316 = vadd.xlane.f32.xlu1 %v313_v22  ;;  %v727_v22 = vld [vmem:[#allocation7] ss:$0 sm:$0xff] }
 0x125   : > { %v315_v1 = vpop.xlane.xlu1 %314 }
 0x126   : > { %v318_v2 = vmul.f32 %v315_v1, %v1097_v14 }
 0x128   : > { %v320_v3 = vadd.f32 1e-05, %v318_v2 }
 0x12a   : > { %730 = vrsqrt.f32 %v320_v3  ;;  %vm328_vm2 = vweird.f32 %v320_v3 }
 0x12d   : > { %v317_v4 = vpop.xlane.xlu1 %316 }
 0x12e   : > { %v319_v5 = vmul.f32 %v317_v4, %v1097_v14 }
 0x130   : > { %v731_v6 = vpop.eup %730  ;;  %v321_v7 = vadd.f32 1e-05, %v319_v5 }
 0x131   : > { %v323_v8 = vmul.f32 %v731_v6, %v320_v3  ;;  %vm329_vm1 = vweird.f32 %v731_v6 }
 0x132   : > { %732 = vrsqrt.f32 %v321_v7  ;;  %vm330_vm3 = vmor %vm328_vm2, %vm329_vm1  ;;  %vm338_vm5 = vweird.f32 %v321_v7 }
 0x133   : > { %v324_v9 = vmul.f32 %v731_v6, %v323_v8 }
 0x135   : > { %v325_v10 = vmul.f32 0.5, %v324_v9 }
 0x137   : > { %v326_v11 = vsub.f32 1.5, %v325_v10 }
 0x138   : > { %v733_v12 = vpop.eup %732 }
 0x139   : > { %v327_v13 = vmul.f32 %v731_v6, %v326_v11  ;;  %v333_v15 = vmul.f32 %v733_v12, %v321_v7  ;;  %vm339_vm4 = vweird.f32 %v733_v12 }
 0x13a   : > { %vm340_vm6 = vmor %vm338_vm5, %vm339_vm4 }
 0x13b   : > { %v331_v18 = vsel %vm330_vm3, %v731_v6, %v327_v13  ;;  %v334_v19 = vmul.f32 %v733_v12, %v333_v15 }
 0x13c   : > { %v342_v20 = vmul.f32 %v331_v18, %v1100_v17  ;;  %v402_v17 = vld [vmem:[%s1154_s4] sm:$0x7] }
 0x13d   : > { %v335_v14 = vmul.f32 0.5, %v334_v19  ;;  %v404_v31 = vperm.slane %v402_v17, 0  ;;  %v405_v32 = vperm.slane %v402_v17, 1 }
 0x13e   : > { %v347_v23 = vmul.f32 %v726_v16, %v342_v20 }
 0x13f   : > { %v336_v24 = vsub.f32 1.5, %v335_v14 }
 0x140   : > { %v352_v25 = vadd.f32 %v727_v22, %v347_v23 }
 0x141   : > { %v337_v26 = vmul.f32 %v733_v12, %v336_v24 }
 0x142   : > { %426 = vmatmul.f32.vlgmr.msra.gmra.mxu0 %v352_v25  ;;  %449 = vmatmul.f32.vlgmr.msra.gmra.mxu1 %v352_v25 }
 0x143   : > { %v341_v27 = vsel %vm340_vm6, %v733_v12, %v337_v26  ;;  %472 = vmatmul.f32.vlgmr.msra.gmra.mxu2 %v352_v25 }
 0x144   : > { %v343_v28 = vmul.f32 %v341_v27, %v1105_v21  ;;  %v406_v21 = vperm.slane %v402_v17, 2 }
 0x146   : > { %v348_v29 = vmul.f32 %v726_v16, %v343_v28 }
 0x148   : > { %v353_v30 = vadd.f32 %v727_v22, %v348_v29 }
 0x14a   : > { %429 = vmatmul.f32.vlgmr.msra.gmra.mxu3 %v353_v30  ;;  %452 = vmatmul.f32.gmra.mxu1 %v353_v30 }
 0x14b   : > { %475 = vmatmul.f32.gmra.mxu2 %v353_v30 }
 0x1bf   : > { %v427_v33 = vpop.f32.mrf.mxu0  ;;  %v450_v34 = vpop.f32.mrf.mxu1 }
 0x1c0   : > { %v428_v35 = vadd.f32 %v427_v33, %v404_v31  ;;  %v451_v36 = vadd.f32 %v450_v34, %v405_v32 }
 0x1c2   : > { %479 = vst [vmem:[%s290_s16] sm:$0xff] %v428_v35 }
 0x1c3   : > { %480 = vst [vmem:[%s290_s16 + $0x8] sm:$0xff] %v451_v36 }
 0x1c6   : > { %v473_v37 = vpop.f32.mrf.mxu2 }
 0x1c7   : > { %v474_v38 = vadd.f32 %v473_v37, %v406_v21  ;;  %v453_v39 = vpop.f32.mrf.mxu1 }
 0x1c8   : > { %v454_v40 = vadd.f32 %v453_v39, %v405_v32 }
 0x1c9   : > { %481 = vst [vmem:[%s290_s16 + $0x10] sm:$0xff] %v474_v38 }
 0x1ca   : > { %483 = vst [vmem:[%s290_s16 + $0x20] sm:$0xff] %v454_v40 }
 0x1cd   : > { %v430_v41 = vpop.f32.mrf.mxu3 }
 0x1ce   : > { %v431_v42 = vadd.f32 %v430_v41, %v404_v31  ;;  %v476_v43 = vpop.f32.mrf.mxu2 }
 0x1cf   : > { %v477_v44 = vadd.f32 %v476_v43, %v406_v21 }
 0x1d0   : > { %482 = vst [vmem:[%s290_s16 + $0x18] sm:$0xff] %v431_v42 }
 0x1d1   : > { %484 = vst [vmem:[%s290_s16 + $0x28] sm:$0xff] %v477_v44 }
 0x1d2   : > { %881 = shalt.err (!%p878_p11)
}
 0x1d3   : > { %s938_s15 = smov 384   ;;  %s939_s14 = smov 24  }
 0x1d4   : > { %656 = dma.vmem_to_hbm [thread:$0]  (%p1053_p7), %s500_s11, 768, %s502_s12, %s486_s22, %s938_s15, %s938_s15, %s939_s14  }
 0x1d5 PF: > { %s516_s16 = sand.u32 1, %s916_s18   ;;  %p1162_p12 = scmp.ge.s32.totalorder %s928_s21, 2 }
 0x1d6   : > { %s517_s17 = scalar_lea.sflag [#allocation4], %s516_s16 }
 0x1d7   : > { %p673_p13 = pnand %p1162_p12, %p1005_p6 }
 0x1d9   : > { %p674_p0 = pneg %p673_p13 }
 0x1db   : > { %911 = dma.done.wait (%p674_p0), %s517_s17, 768  }
 0x1dc   : > { %913 = vsyncadd (%p674_p0), %s517_s17, 4294966528  ;;  %p20_p3 = scmp.ge.s32.totalorder %s1039_s27, 4   ;;  %s1163_s18 = smov %s920_s19 }
 0x1dd   : > { %s1164_s19 = smov %s924_s20  ;;  %s1165_s20 = smov %s1049_s6 }
 0x1de   : > { %s1166_s21 = smov %s1039_s27  ;;  %22 = sbr.rel (!%p20_p3) target bundleno = 7 (0x7), region = 97 }
 0x1e3   :  { %523 = vsyncpa [#allocation3], 1 }
 0x1e4   :  { %525 = vsyncpa [#allocation3 + $0x1], 1 }
 0x1e5   :  { %526 = vsyncpa [#allocation6], 1 }
 0x1e6   :  { %527 = vsyncpa [#allocation9], 1 }
 0x1e7   :  { %528 = vsyncpa [#allocation4], 1 }
 0x1e8   :  { %530 = vsyncpa [#allocation4 + $0x1], 1 }

</bundles_post_ra>
